<compile_context>
chip_gen: v5e
topology: v5e:2x2
jax: 0.10.0
libtpu: 0.0.40
codegen_flags: <defaults>
</compile_context>

<pallas_src>
import functools

import jax
import jax.numpy as jnp
from jax.experimental import pallas as pl
from jax.experimental.pallas import tpu as pltpu


def _round_up(x, m):
    return (x + m - 1) // m * m


def _pad2(a, rows, cols):
    return jnp.pad(a, ((0, rows - a.shape[0]), (0, cols - a.shape[1])))


def bow_kernel(idx_ref, mask_ref, emb_ref, w_in_ref, b_in_ref,
               w_h_ref, b_h_ref, w_out_ref, b_out_ref, out_ref,
               *, tb, n_pad):
    """One batch tile (TB rows) per grid step.

    idx_ref:   (TB*n_pad, 1) int32  token ids (batch-major, seq contiguous per row)
    mask_ref:  (TB*n_pad, 1) f32    binary mask (1 real token, 0 pad)
    emb_ref:   (V_pad, d_pad)       zero-padded embedding table (resident)
    w_in_ref:  (d_pad, h_pad), b_in_ref: (1, h_pad)
    w_h_ref:   (h_pad, h_pad), b_h_ref:  (1, h_pad)
    w_out_ref: (1, h_pad),     b_out_ref:(1, 1)
    out_ref:   (TB, 1)              per-step output block
    """
    v_pad = emb_ref.shape[0]
    rows = tb * n_pad

    # --- fused embedding gather: one-hot(ids) @ word_mat on the MXU ----------------
    ids = idx_ref[...]                                               # (rows, 1) int32
    lane_iota = jax.lax.broadcasted_iota(jnp.int32, (rows, v_pad), 1)
    one_hot = (ids == lane_iota).astype(jnp.float32)                 # (rows, V_pad)
    xv = jnp.dot(one_hot, emb_ref[...],
                 preferred_element_type=jnp.float32)                 # (rows, d_pad)

    # --- word-vector layer + ReLU ---------------------------------------------------
    z1 = jnp.dot(xv, w_in_ref[...], preferred_element_type=jnp.float32)
    z1 = jnp.maximum(z1 + b_in_ref[...], 0.0)                        # (rows, h_pad)

    # --- mask padded positions, then max-pool over the sequence axis ---------------
    z1m = z1 * mask_ref[...]                                         # (rows, h_pad)
    pooled = jnp.max(z1m.reshape(tb, n_pad, z1m.shape[-1]), axis=1)  # (TB, h_pad)

    # dropout: identity in eval mode

    # --- hidden layer + ReLU --------------------------------------------------------
    z2 = jnp.dot(pooled, w_h_ref[...], preferred_element_type=jnp.float32)
    z2 = jnp.maximum(z2 + b_h_ref[...], 0.0)                         # (TB, h_pad)

    # --- output layer as VPU mul + lane reduction (avoids N=1 MXU matmul) ----------
    out = jnp.sum(z2 * w_out_ref[...], axis=1, keepdims=True) + b_out_ref[...]  # (TB, 1)

    out_ref[...] = out.astype(out_ref.dtype)


def bow_model_forward(x_idx, mask, word_mat, params, *, block_b=256):
    """Layout prep (padding / transposes) + the fused Pallas kernel."""
    B, n = x_idx.shape
    V, d = word_mat.shape
    h = params["w_in"].shape[0]

    # Pad seq dim to the sublane granule and feature/vocab dims to full lanes.
    n_pad = _round_up(n, 8)
    d_pad = _round_up(d, 128)
    h_pad = _round_up(h, 128)
    v_pad = _round_up(V, 128)

    # Batch tile: large enough to amortize grid-step overhead, multiple of 8.
    # (VMEM note: per-step live intermediates ~ 3 * TB*n_pad*128*4 bytes; TB=256 with
    #  n_pad=8 is ~3 MiB, comfortably inside the default scoped limit on v5e/v6e/v7x.)
    tb = min(block_b, _round_up(B, 8))
    b_pad = _round_up(B, tb)

    # Streamed inputs: batch-major flattened token ids + mask as lane-1 columns.
    idx_p = jnp.zeros((b_pad, n_pad), jnp.int32).at[:B, :n].set(x_idx.astype(jnp.int32))
    msk_p = jnp.zeros((b_pad, n_pad), jnp.float32).at[:B, :n].set(mask.astype(jnp.float32))
    idx_col = idx_p.reshape(b_pad * n_pad, 1)
    msk_col = msk_p.reshape(b_pad * n_pad, 1)

    # Resident parameters, zero-padded; PyTorch Linear stores W as (out, in) -> (in, out).
    emb_p = _pad2(word_mat.astype(jnp.float32), v_pad, d_pad)
    w_in_p = _pad2(params["w_in"].T.astype(jnp.float32), d_pad, h_pad)
    b_in_p = _pad2(params["b_in"].reshape(1, h).astype(jnp.float32), 1, h_pad)
    w_h_p = _pad2(params["w_h"].T.astype(jnp.float32), h_pad, h_pad)
    b_h_p = _pad2(params["b_h"].reshape(1, h).astype(jnp.float32), 1, h_pad)
    w_out_p = _pad2(params["w_out"].reshape(1, h).astype(jnp.float32), 1, h_pad)
    b_out_p = params["b_out"].reshape(1, 1).astype(jnp.float32)

    kernel = functools.partial(bow_kernel, tb=tb, n_pad=n_pad)

    out = pl.pallas_call(
        kernel,
        out_shape=jax.ShapeDtypeStruct((b_pad, 1), jnp.float32),
        grid=(b_pad // tb,),
        in_specs=[
            pl.BlockSpec((tb * n_pad, 1), lambda b: (b, 0)),   # token ids (streamed)
            pl.BlockSpec((tb * n_pad, 1), lambda b: (b, 0)),   # mask      (streamed)
            pl.BlockSpec((v_pad, d_pad), lambda b: (0, 0)),    # word_mat  (resident)
            pl.BlockSpec((d_pad, h_pad), lambda b: (0, 0)),    # W_in
            pl.BlockSpec((1, h_pad), lambda b: (0, 0)),        # b_in
            pl.BlockSpec((h_pad, h_pad), lambda b: (0, 0)),    # W_h
            pl.BlockSpec((1, h_pad), lambda b: (0, 0)),        # b_h
            pl.BlockSpec((1, h_pad), lambda b: (0, 0)),        # W_out (as a row)
            pl.BlockSpec((1, 1), lambda b: (0, 0)),            # b_out
        ],
        # Per-step blocked output -> no resident accumulator, batch axis is parallel.
        out_specs=pl.BlockSpec((tb, 1), lambda b: (b, 0)),
        compiler_params=pltpu.CompilerParams(
            dimension_semantics=("parallel",)),
    )(idx_col, msk_col, emb_p, w_in_p, b_in_p, w_h_p, b_h_p, w_out_p, b_out_p)

    return out[:B]


def reference_forward(x_idx, mask, lengths, word_mat, params):
    """Pure-JAX reference mirroring the PyTorch forward (eval mode, pool='max')."""
    x_vecs = jnp.take(word_mat, x_idx, axis=0)                       # (B, n, d)
    z1 = jax.nn.relu(x_vecs @ params["w_in"].T + params["b_in"])     # (B, n, h)
    z1m = z1 * mask.astype(jnp.float32)[:, :, None]                  # (B, n, h)
    pooled = jnp.max(z1m, axis=1)                                    # (B, h)
    z2 = jax.nn.relu(pooled @ params["w_h"].T + params["b_h"])       # (B, h)
    return z2 @ params["w_out"].T + params["b_out"]                  # (B, 1)


if __name__ == "__main__":
    B, n = 2, 8            # batch, sequence length
    V = 50                 # vocabulary size
    d = 32                 # word_vec_size
    h = 32                 # hidden_size

    key = jax.random.PRNGKey(0)
    k_wm, k_x, k_win, k_bin, k_wh, k_bh, k_wo, k_bo = jax.random.split(key, 8)

    # Pretrained word matrix (embedding table).
    word_mat = jax.random.normal(k_wm, (V, d), dtype=jnp.float32)

    # Deterministic parameter init (PyTorch Linear layout: W is (out, in)).
    params = {
        "w_in": 0.1 * jax.random.normal(k_win, (h, d), dtype=jnp.float32),
        "b_in": 0.1 * jax.random.normal(k_bin, (h,), dtype=jnp.float32),
        "w_h": 0.1 * jax.random.normal(k_wh, (h, h), dtype=jnp.float32),
        "b_h": 0.1 * jax.random.normal(k_bh, (h,), dtype=jnp.float32),
        "w_out": 0.1 * jax.random.normal(k_wo, (1, h), dtype=jnp.float32),
        "b_out": 0.1 * jax.random.normal(k_bo, (1,), dtype=jnp.float32),
    }

    # Batch: x is (B, n, 1) word indices, mask (B, n), lengths (B,).
    lengths = jnp.array([8, 5], dtype=jnp.int32)
    x = jax.random.randint(k_x, (B, n, 1), 0, V, dtype=jnp.int32)
    mask = (jnp.arange(n)[None, :] < lengths[:, None]).astype(jnp.float32)
    x_idx = x[..., 0]  # squeeze the size-1 "choice" dim of the index tensor

    out = bow_model_forward(x_idx, mask, word_mat, params)
    out = jax.block_until_ready(out)

    ref = reference_forward(x_idx, mask, lengths, word_mat, params)
    assert out.shape == (B, 1)
    assert jnp.allclose(out, ref, atol=1e-3, rtol=1e-3), (out, ref)

    print("KERNEL_OK")
</pallas_src>

<mosaic_0001>
module attributes {stable_mosaic.version = 11 : i64} {
  func.func @bow_kernel(%arg0: i32, %arg1: memref<64x1xi32, #tpu.memory_space<vmem>>, %arg2: memref<64x1xf32, #tpu.memory_space<vmem>>, %arg3: memref<128x128xf32, #tpu.memory_space<vmem>>, %arg4: memref<128x128xf32, #tpu.memory_space<vmem>>, %arg5: memref<1x128xf32, #tpu.memory_space<vmem>>, %arg6: memref<128x128xf32, #tpu.memory_space<vmem>>, %arg7: memref<1x128xf32, #tpu.memory_space<vmem>>, %arg8: memref<1x128xf32, #tpu.memory_space<vmem>>, %arg9: memref<1x1xf32, #tpu.memory_space<vmem>>, %arg10: memref<8x1xf32, #tpu.memory_space<vmem>>) attributes {dimension_semantics = [#tpu.dimension_semantics<parallel>], iteration_bounds = array<i64: 1>, scalar_prefetch = 0 : i64, scratch_operands = 0 : i64, tpu.core_type = #tpu.core_type<tc>, window_params = [{transform_indices = @transform_0, window_bounds = array<i64: 64, 1>}, {transform_indices = @transform_1, window_bounds = array<i64: 64, 1>}, {pipeline_mode = #tpu.pipeline_mode<synchronous>, transform_indices = @transform_2, window_bounds = array<i64: 128, 128>}, {pipeline_mode = #tpu.pipeline_mode<synchronous>, transform_indices = @transform_3, window_bounds = array<i64: 128, 128>}, {pipeline_mode = #tpu.pipeline_mode<synchronous>, transform_indices = @transform_4, window_bounds = array<i64: 1, 128>}, {pipeline_mode = #tpu.pipeline_mode<synchronous>, transform_indices = @transform_5, window_bounds = array<i64: 128, 128>}, {pipeline_mode = #tpu.pipeline_mode<synchronous>, transform_indices = @transform_6, window_bounds = array<i64: 1, 128>}, {pipeline_mode = #tpu.pipeline_mode<synchronous>, transform_indices = @transform_7, window_bounds = array<i64: 1, 128>}, {pipeline_mode = #tpu.pipeline_mode<synchronous>, transform_indices = @transform_8, window_bounds = array<i64: 1, 1>}, {transform_indices = @transform_9, window_bounds = array<i64: 8, 1>}]} {
    %c0 = arith.constant 0 : index
    %c0_0 = arith.constant 0 : index
    %0 = vector.load %arg1[%c0, %c0_0] : memref<64x1xi32, #tpu.memory_space<vmem>>, vector<64x1xi32>
    %1 = tpu.iota {dimensions = array<i32: 1>} : vector<64x128xi32>
    %2 = vector.broadcast %0 : vector<64x1xi32> to vector<64x128xi32>
    %3 = arith.cmpi eq, %2, %1 : vector<64x128xi32>
    %4 = arith.extui %3 : vector<64x128xi1> to vector<64x128xi32>
    %5 = arith.sitofp %4 : vector<64x128xi32> to vector<64x128xf32>
    %c0_1 = arith.constant 0 : index
    %c0_2 = arith.constant 0 : index
    %6 = vector.load %arg3[%c0_1, %c0_2] : memref<128x128xf32, #tpu.memory_space<vmem>>, vector<128x128xf32>
    %cst = arith.constant dense<0.000000e+00> : vector<64x128xf32>
    %7 = tpu.matmul %5, %6, %cst {dimension_numbers = #tpu.dot_dimension_numbers<[1], [0], [0], [1], [0, 0, 1, 1], [], []>} : vector<64x128xf32>, vector<128x128xf32>, vector<64x128xf32> -> vector<64x128xf32>
    %c0_3 = arith.constant 0 : index
    %c0_4 = arith.constant 0 : index
    %8 = vector.load %arg4[%c0_3, %c0_4] : memref<128x128xf32, #tpu.memory_space<vmem>>, vector<128x128xf32>
    %cst_5 = arith.constant dense<0.000000e+00> : vector<64x128xf32>
    %9 = tpu.matmul %7, %8, %cst_5 {dimension_numbers = #tpu.dot_dimension_numbers<[1], [0], [0], [1], [0, 0, 1, 1], [], []>} : vector<64x128xf32>, vector<128x128xf32>, vector<64x128xf32> -> vector<64x128xf32>
    %c0_6 = arith.constant 0 : index
    %c0_7 = arith.constant 0 : index
    %10 = vector.load %arg5[%c0_6, %c0_7] : memref<1x128xf32, #tpu.memory_space<vmem>>, vector<1x128xf32>
    %11 = vector.broadcast %10 : vector<1x128xf32> to vector<64x128xf32>
    %12 = arith.addf %9, %11 : vector<64x128xf32>
    %cst_8 = arith.constant 0.000000e+00 : f32
    %13 = vector.broadcast %cst_8 : f32 to vector<64x128xf32>
    %14 = arith.maximumf %12, %13 : vector<64x128xf32>
    %c0_9 = arith.constant 0 : index
    %c0_10 = arith.constant 0 : index
    %15 = vector.load %arg2[%c0_9, %c0_10] : memref<64x1xf32, #tpu.memory_space<vmem>>, vector<64x1xf32>
    %16 = vector.broadcast %15 : vector<64x1xf32> to vector<64x128xf32>
    %17 = arith.mulf %14, %16 : vector<64x128xf32>
    %18 = vector.shape_cast %17 : vector<64x128xf32> to vector<8x8x128xf32>
    %cst_11 = arith.constant dense<0xFF800000> : vector<8x128xf32>
    %19 = vector.multi_reduction <maximumf>, %18, %cst_11 [1] : vector<8x8x128xf32> to vector<8x128xf32>
    %c0_12 = arith.constant 0 : index
    %c0_13 = arith.constant 0 : index
    %20 = vector.load %arg6[%c0_12, %c0_13] : memref<128x128xf32, #tpu.memory_space<vmem>>, vector<128x128xf32>
    %cst_14 = arith.constant dense<0.000000e+00> : vector<8x128xf32>
    %21 = tpu.matmul %19, %20, %cst_14 {dimension_numbers = #tpu.dot_dimension_numbers<[1], [0], [0], [1], [0, 0, 1, 1], [], []>} : vector<8x128xf32>, vector<128x128xf32>, vector<8x128xf32> -> vector<8x128xf32>
    %c0_15 = arith.constant 0 : index
    %c0_16 = arith.constant 0 : index
    %22 = vector.load %arg7[%c0_15, %c0_16] : memref<1x128xf32, #tpu.memory_space<vmem>>, vector<1x128xf32>
    %23 = vector.broadcast %22 : vector<1x128xf32> to vector<8x128xf32>
    %24 = arith.addf %21, %23 : vector<8x128xf32>
    %cst_17 = arith.constant 0.000000e+00 : f32
    %25 = vector.broadcast %cst_17 : f32 to vector<8x128xf32>
    %26 = arith.maximumf %24, %25 : vector<8x128xf32>
    %c0_18 = arith.constant 0 : index
    %c0_19 = arith.constant 0 : index
    %27 = vector.load %arg8[%c0_18, %c0_19] : memref<1x128xf32, #tpu.memory_space<vmem>>, vector<1x128xf32>
    %28 = vector.broadcast %27 : vector<1x128xf32> to vector<8x128xf32>
    %29 = arith.mulf %26, %28 : vector<8x128xf32>
    %cst_20 = arith.constant dense<0.000000e+00> : vector<8xf32>
    %30 = vector.multi_reduction <add>, %29, %cst_20 [1] : vector<8x128xf32> to vector<8xf32>
    %31 = vector.shape_cast %30 : vector<8xf32> to vector<8x1xf32>
    %c0_21 = arith.constant 0 : index
    %c0_22 = arith.constant 0 : index
    %32 = vector.load %arg9[%c0_21, %c0_22] : memref<1x1xf32, #tpu.memory_space<vmem>>, vector<1x1xf32>
    %33 = vector.broadcast %32 : vector<1x1xf32> to vector<8x1xf32>
    %34 = arith.addf %31, %33 : vector<8x1xf32>
    %c0_23 = arith.constant 0 : index
    %c0_24 = arith.constant 0 : index
    %35 = vector.load %arg10[%c0_23, %c0_24] : memref<8x1xf32, #tpu.memory_space<vmem>>, vector<8x1xf32>
    tpu.vector_store %arg10[%c0_23, %c0_24], %34 {strides = array<i32>} : memref<8x1xf32, #tpu.memory_space<vmem>>, vector<8x1xf32>,
    return
  }
  func.func @transform_0(%arg0: i32) -> (i32, i32) {
    %c0_i32 = arith.constant 0 : i32
    %c0_i32_0 = arith.constant 0 : i32
    return %arg0, %c0_i32 : i32, i32
  }
  func.func @transform_1(%arg0: i32) -> (i32, i32) {
    %c0_i32 = arith.constant 0 : i32
    %c0_i32_0 = arith.constant 0 : i32
    return %arg0, %c0_i32 : i32, i32
  }
  func.func @transform_2(%arg0: i32) -> (i32, i32) {
    %c0_i32 = arith.constant 0 : i32
    %c0_i32_0 = arith.constant 0 : i32
    %c0_i32_1 = arith.constant 0 : i32
    return %c0_i32, %c0_i32_0 : i32, i32
  }
  func.func @transform_3(%arg0: i32) -> (i32, i32) {
    %c0_i32 = arith.constant 0 : i32
    %c0_i32_0 = arith.constant 0 : i32
    %c0_i32_1 = arith.constant 0 : i32
    return %c0_i32, %c0_i32_0 : i32, i32
  }
  func.func @transform_4(%arg0: i32) -> (i32, i32) {
    %c0_i32 = arith.constant 0 : i32
    %c0_i32_0 = arith.constant 0 : i32
    %c0_i32_1 = arith.constant 0 : i32
    return %c0_i32, %c0_i32_0 : i32, i32
  }
  func.func @transform_5(%arg0: i32) -> (i32, i32) {
    %c0_i32 = arith.constant 0 : i32
    %c0_i32_0 = arith.constant 0 : i32
    %c0_i32_1 = arith.constant 0 : i32
    return %c0_i32, %c0_i32_0 : i32, i32
  }
  func.func @transform_6(%arg0: i32) -> (i32, i32) {
    %c0_i32 = arith.constant 0 : i32
    %c0_i32_0 = arith.constant 0 : i32
    %c0_i32_1 = arith.constant 0 : i32
    return %c0_i32, %c0_i32_0 : i32, i32
  }
  func.func @transform_7(%arg0: i32) -> (i32, i32) {
    %c0_i32 = arith.constant 0 : i32
    %c0_i32_0 = arith.constant 0 : i32
    %c0_i32_1 = arith.constant 0 : i32
    return %c0_i32, %c0_i32_0 : i32, i32
  }
  func.func @transform_8(%arg0: i32) -> (i32, i32) {
    %c0_i32 = arith.constant 0 : i32
    %c0_i32_0 = arith.constant 0 : i32
    %c0_i32_1 = arith.constant 0 : i32
    return %c0_i32, %c0_i32_0 : i32, i32
  }
  func.func @transform_9(%arg0: i32) -> (i32, i32) {
    %c0_i32 = arith.constant 0 : i32
    %c0_i32_0 = arith.constant 0 : i32
    return %arg0, %c0_i32 : i32, i32
  }
}

</mosaic_0001>

<bundles_post_ra>
// kernel: tpu_custom_call.1
= control target key start
LH: loop header
LB: loop body
LE: loop exit
PB: predicated region body
PF: predicated region fallthrough
CT: control target
= control target key end

     0   :  { %s718_s0 = inlined_call_operand.vmem [shape: s32[64,1], index: 0, kind: input, shape index: {}]   ;;  %s719_s1 = inlined_call_operand.vmem [shape: f32[64,1], index: 1, kind: input, shape index: {}]   ;;  %s720_s2 = inlined_call_operand.vmem [shape: f32[128,128], index: 2, kind: input, shape index: {}]   ;;  %s721_s3 = inlined_call_operand.hbm [shape: f32[128,128], index: 3, kind: input, shape index: {}]   ;;  %s722_s4 = inlined_call_operand.vmem [shape: f32[1,128], index: 4, kind: input, shape index: {}]   ;;  %s723_s5 = inlined_call_operand.hbm [shape: f32[128,128], index: 5, kind: input, shape index: {}]   ;;  %s724_s6 = inlined_call_operand.vmem [shape: f32[1,128], index: 6, kind: input, shape index: {}]   ;;  %s725_s7 = inlined_call_operand.vmem [shape: f32[1,128], index: 7, kind: input, shape index: {}]   ;;  %s726_s8 = inlined_call_operand.<no memory space> [shape: f32[1,1], index: 8, kind: input, shape index: {}]   ;;  %s727_s9 = inlined_call_operand.vmem [shape: f32[8,1], index: 9, kind: output, shape index: {}]  }
   0x1   :  { %v14_v0 = vstv %s726_s8 }
   0x2   :  { %15 = vst [vmem:[#allocation2] sm:$0x1] %v14_v0 }
   0x3   :  { %16 = vsyncpa [#allocation4], 0  ;;  %s28_s13 = sshll.u32 %s721_s3, 4  ;;  %s29_s13 = int_to_ptr.hbm [resolvable:$true] %s28_s13 }
   0x4   :  { %17 = vsyncpa [#allocation6], 0  ;;  %s535_s14 = smov [#allocation3]   ;;  %s43_s18 = sshll.u32 %s723_s5, 4  ;;  %s44_s18 = int_to_ptr.hbm [resolvable:$true] %s43_s18 }
   0x5   :  { %s30_s15 = sshll.u32 %s535_s14, 4  ;;  %s536_s19 = smov 128   ;;  %s31_s15 = int_to_ptr.vmem [resolvable:$true] %s30_s15 }
   0x6   :  { %s537_s20 = smov 8   ;;  %s538_s8 = smov [#allocation5]  }
   0x7   :  { %36 = dma.hbm_to_vmem [thread:$0]  %s29_s13, 2048, %s31_s15, [#allocation4], %s536_s19, %s536_s19, %s537_s20  }
   0x8   :  { %s45_s21 = sshll.u32 %s538_s8, 4  ;;  %s46_s21 = int_to_ptr.vmem [resolvable:$true] %s45_s21 }
   0x9   :  { %51 = dma.hbm_to_vmem [thread:$0]  %s44_s18, 2048, %s46_s21, [#allocation6], %s536_s19, %s536_s19, %s537_s20  }
   0xa   :  { %531 = dma.done.wait [#allocation4], 2048  }
   0xb   :  { %532 = vsyncadd [#allocation4], 4294965248 }
   0xc   :  { %533 = dma.done.wait [#allocation6], 2048  }
   0xd   :  { %534 = vsyncadd [#allocation6], 4294965248  ;;  %v539_v1 = vmov 0   ;;  %v68_v2 = vld [vmem:[%s718_s0 + $0x10] sm:$0xff]  ;;  %v66_v3 = vld [vmem:[%s718_s0] sm:$0xff]  ;;  %v74_v35 = vlaneseq  ;;  %v540_v38 = vmov 1.0  }
   0xe   :  { %477 = vset.pattern.permute.xlu1 %v539_v1  ;;  %476 = vset.pattern.permute.xlu0 %v539_v1  ;;  %v70_v4 = vld [vmem:[%s718_s0 + $0x20] sm:$0xff]  ;;  %v69_v5 = vld [vmem:[%s718_s0 + $0x18] sm:$0xff]  ;;  %v67_v6 = vld [vmem:[%s718_s0 + $0x8] sm:$0xff]  ;;  %vm382_vm8 = vcmask 1041409   ;;  %vm384_vm9 = vcmask 1042434   ;;  %vm386_vm10 = vcmask 1043459  }
   0xf   :  { %478 = vset.pattern.permute.xlu2 %v539_v1  ;;  %83 = vperm.xlu1 %477, %v68_v2   ;;  %v71_v7 = vld [vmem:[%s718_s0 + $0x28] sm:$0xff]  ;;  %v139_v8 = vld [vmem:[%s720_s2 + $0x78] sm:$0xff]  ;;  %v138_v9 = vld [vmem:[%s720_s2 + $0x70] sm:$0xff]  ;;  %v75_v36 = vand.u32 127, %v74_v35  ;;  %vm388_vm11 = vcmask 1044484   ;;  %vm390_vm12 = vcmask 1045509  }
  0x10   :  { %77 = vperm.xlu0 %476, %v66_v3   ;;  %89 = vperm.xlu2 %478, %v70_v4   ;;  %v137_v10 = vld [vmem:[%s720_s2 + $0x68] sm:$0xff]  ;;  %v136_v11 = vld [vmem:[%s720_s2 + $0x60] sm:$0xff]  ;;  %v73_v12 = vld [vmem:[%s718_s0 + $0x38] sm:$0xff]  ;;  %vm392_vm13 = vcmask 1046534   ;;  %vm394_vm14 = vcmask 1047559   ;;  %vm430_vm15 = vcmask 7168  }
  0x11   :  { %140 = vmatpush.msra.mxu0 %v139_v8  ;;  %454 = vmatpush.msra.mxu3 %v139_v8  ;;  %v72_v13 = vld [vmem:[%s718_s0 + $0x30] sm:$0xff]  ;;  %v135_v14 = vld [vmem:[%s720_s2 + $0x58] sm:$0xff]  ;;  %v250_v15 = vld [vmem:[%s719_s1] sm:$0xff] }
  0x12   :  { %v134_v16 = vld [vmem:[%s720_s2 + $0x50] sm:$0xff]  ;;  %v133_v17 = vld [vmem:[%s720_s2 + $0x48] sm:$0xff]  ;;  %v132_v18 = vld [vmem:[%s720_s2 + $0x40] sm:$0xff] }
  0x13   :  { %141 = vmatpush.msra.mxu0 %v138_v9  ;;  %455 = vmatpush.msra.mxu3 %v138_v9  ;;  %v252_v19 = vld [vmem:[%s719_s1 + $0x10] sm:$0xff]  ;;  %v251_v20 = vld [vmem:[%s719_s1 + $0x8] sm:$0xff]  ;;  %v131_v21 = vld [vmem:[%s720_s2 + $0x38] sm:$0xff] }
  0x14   :  { %v253_v22 = vld [vmem:[%s719_s1 + $0x18] sm:$0xff]  ;;  %v130_v23 = vld [vmem:[%s720_s2 + $0x30] sm:$0xff]  ;;  %v129_v24 = vld [vmem:[%s720_s2 + $0x28] sm:$0xff] }
  0x15   :  { %142 = vmatpush.msra.mxu0 %v137_v10  ;;  %456 = vmatpush.msra.mxu3 %v137_v10  ;;  %v128_v25 = vld [vmem:[%s720_s2 + $0x20] sm:$0xff]  ;;  %v255_v26 = vld [vmem:[%s719_s1 + $0x28] sm:$0xff]  ;;  %v256_v28 = vld [vmem:[%s719_s1 + $0x30] sm:$0xff] }
  0x16   :  { %v254_v27 = vld [vmem:[%s719_s1 + $0x20] sm:$0xff]  ;;  %v257_v29 = vld [vmem:[%s719_s1 + $0x38] sm:$0xff]  ;;  %v126_v31 = vld [vmem:[%s720_s2 + $0x10] sm:$0xff] }
  0x17   :  { %86 = vperm.xlu1 %477, %v69_v5   ;;  %143 = vmatpush.msra.mxu0 %v136_v11  ;;  %v127_v30 = vld [vmem:[%s720_s2 + $0x18] sm:$0xff]  ;;  %v125_v32 = vld [vmem:[%s720_s2 + $0x8] sm:$0xff]  ;;  %v124_v33 = vld [vmem:[%s720_s2] sm:$0xff] }
  0x18   :  { %80 = vperm.xlu0 %476, %v67_v6   ;;  %92 = vperm.xlu2 %478, %v71_v7   ;;  %v196_v42 = vld [vmem:[#allocation3 + $0x78] sm:$0xff]  ;;  %v195_v43 = vld [vmem:[#allocation3 + $0x70] sm:$0xff]  ;;  %v194_v44 = vld [vmem:[#allocation3 + $0x68] sm:$0xff] }
  0x19   :  { %457 = vmatpush.msra.mxu3 %v136_v11  ;;  %144 = vmatpush.msra.mxu0 %v135_v14  ;;  %v193_v46 = vld [vmem:[#allocation3 + $0x60] sm:$0xff]  ;;  %v192_v47 = vld [vmem:[#allocation3 + $0x58] sm:$0xff]  ;;  %v191_v49 = vld [vmem:[#allocation3 + $0x50] sm:$0xff] }
  0x1a   :  { %201 = vmatpush.msra.mxu1 %v196_v42  ;;  %v190_v50 = vld [vmem:[#allocation3 + $0x48] sm:$0xff]  ;;  %v189_v51 = vld [vmem:[#allocation3 + $0x40] sm:$0xff]  ;;  %v188_v53 = vld [vmem:[#allocation3 + $0x38] sm:$0xff] }
  0x1b   :  { %458 = vmatpush.msra.mxu3 %v135_v14  ;;  %145 = vmatpush.msra.mxu0 %v134_v16  ;;  %v187_v54 = vld [vmem:[#allocation3 + $0x30] sm:$0xff]  ;;  %v186_v55 = vld [vmem:[#allocation3 + $0x28] sm:$0xff]  ;;  %v185_v56 = vld [vmem:[#allocation3 + $0x20] sm:$0xff] }
  0x1c   :  { %202 = vmatpush.msra.mxu1 %v195_v43  ;;  %v184_v57 = vld [vmem:[#allocation3 + $0x18] sm:$0xff]  ;;  %v183_v58 = vld [vmem:[#allocation3 + $0x10] sm:$0xff]  ;;  %v182_v59 = vld [vmem:[#allocation3 + $0x8] sm:$0xff] }
  0x1d   :  { %459 = vmatpush.msra.mxu3 %v134_v16  ;;  %146 = vmatpush.msra.mxu0 %v133_v17  ;;  %v181_v60 = vld [vmem:[#allocation3] sm:$0xff]  ;;  %v369_v7 = vld [vmem:[#allocation5 + $0x78] sm:$0xff]  ;;  %v368_v8 = vld [vmem:[#allocation5 + $0x70] sm:$0xff] }
  0x1e   :  { %203 = vmatpush.msra.mxu1 %v194_v44  ;;  %397 = vmatpush.msra.mxu2 %v369_v7  ;;  %v367_v10 = vld [vmem:[#allocation5 + $0x68] sm:$0xff]  ;;  %v366_v11 = vld [vmem:[#allocation5 + $0x60] sm:$0xff] }
  0x1f   :  { %98 = vperm.xlu1 %477, %v73_v12   ;;  %460 = vmatpush.msra.mxu3 %v133_v17  ;;  %v365_v12 = vld [vmem:[#allocation5 + $0x58] sm:$0xff]  ;;  %v362_v16 = vld [vmem:[#allocation5 + $0x40] sm:$0xff]  ;;  %v355_v35 = vld [vmem:[#allocation5 + $0x8] sm:$0xff] }
  0x20   :  { %95 = vperm.xlu0 %476, %v72_v13   ;;  %260 = vperm.xlu2 %478, %v250_v15   ;;  %v364_v13 = vld [vmem:[#allocation5 + $0x50] sm:$0xff]  ;;  %v363_v15 = vld [vmem:[#allocation5 + $0x48] sm:$0xff]  ;;  %v361_v17 = vld [vmem:[#allocation5 + $0x38] sm:$0xff] }
  0x21   :  { %147 = vmatpush.msra.mxu0 %v132_v18  ;;  %461 = vmatpush.msra.mxu3 %v132_v18  ;;  %v360_v18 = vld [vmem:[#allocation5 + $0x30] sm:$0xff] }
  0x22   :  { %204 = vmatpush.msra.mxu1 %v193_v46  ;;  %398 = vmatpush.msra.mxu2 %v368_v8 }
  0x23   :  { %148 = vmatpush.msra.mxu0 %v131_v21  ;;  %462 = vmatpush.msra.mxu3 %v131_v21 }
  0x24   :  { %205 = vmatpush.msra.mxu1 %v192_v47  ;;  %399 = vmatpush.msra.mxu2 %v367_v10 }
  0x25   :  { %149 = vmatpush.msra.mxu0 %v130_v23  ;;  %463 = vmatpush.msra.mxu3 %v130_v23 }
  0x26   :  { %206 = vmatpush.msra.mxu1 %v191_v49  ;;  %400 = vmatpush.msra.mxu2 %v366_v11 }
  0x27   :  { %270 = vperm.xlu1 %477, %v252_v19   ;;  %150 = vmatpush.msra.mxu0 %v129_v24  ;;  %v699_v19 = vld [vmem:[%s722_s4] ss:$0 sm:$0xff] }
  0x28   :  { %265 = vperm.xlu0 %476, %v251_v20   ;;  %275 = vperm.xlu2 %478, %v253_v22   ;;  %v359_v22 = vld [vmem:[#allocation5 + $0x28] sm:$0xff] }
  0x29   :  { %464 = vmatpush.msra.mxu3 %v129_v24  ;;  %151 = vmatpush.msra.mxu0 %v128_v25 }
  0x2a   :  { %207 = vmatpush.msra.mxu1 %v190_v50  ;;  %401 = vmatpush.msra.mxu2 %v365_v12 }
  0x2b   :  { %465 = vmatpush.msra.mxu3 %v128_v25  ;;  %152 = vmatpush.msra.mxu0 %v127_v30 }
  0x2c   :  { %208 = vmatpush.msra.mxu1 %v189_v51  ;;  %402 = vmatpush.msra.mxu2 %v364_v13 }
  0x2d   :  { %466 = vmatpush.msra.mxu3 %v127_v30  ;;  %153 = vmatpush.msra.mxu0 %v126_v31  ;;  %v357_v30 = vld [vmem:[#allocation5 + $0x18] sm:$0xff] }
  0x2e   :  { %209 = vmatpush.msra.mxu1 %v188_v53  ;;  %403 = vmatpush.msra.mxu2 %v363_v15 }
  0x2f   :  { %285 = vperm.xlu1 %477, %v255_v26   ;;  %467 = vmatpush.msra.mxu3 %v126_v31 }
  0x30   :  { %280 = vperm.xlu0 %476, %v254_v27   ;;  %290 = vperm.xlu2 %478, %v256_v28   ;;  %v358_v27 = vld [vmem:[#allocation5 + $0x20] sm:$0xff] }
  0x31   :  { %154 = vmatpush.msra.mxu0 %v125_v32  ;;  %468 = vmatpush.msra.mxu3 %v125_v32  ;;  %v356_v32 = vld [vmem:[#allocation5 + $0x10] sm:$0xff] }
  0x32   :  { %210 = vmatpush.msra.mxu1 %v187_v54  ;;  %404 = vmatpush.msra.mxu2 %v362_v16 }
  0x33   :  { %155 = vmatpush.msra.mxu0 %v124_v33  ;;  %469 = vmatpush.msra.mxu3 %v124_v33 }
  0x34   :  { %211 = vmatpush.msra.mxu1 %v186_v55  ;;  %405 = vmatpush.msra.mxu2 %v361_v17 }
  0x36   :  { %212 = vmatpush.msra.mxu1 %v185_v56  ;;  %406 = vmatpush.msra.mxu2 %v360_v18 }
  0x38   :  { %295 = vperm.xlu0 %476, %v257_v29   ;;  %213 = vmatpush.msra.mxu1 %v184_v57 }
  0x39   :  { %407 = vmatpush.msra.mxu2 %v359_v22 }
  0x3a   :  { %214 = vmatpush.msra.mxu1 %v183_v58 }
  0x3b   :  { %408 = vmatpush.msra.mxu2 %v358_v27 }
  0x3c   :  { %215 = vmatpush.msra.mxu1 %v182_v59 }
  0x3d   :  { %409 = vmatpush.msra.mxu2 %v357_v30 }
  0x3e   :  { %216 = vmatpush.msra.mxu1 %v181_v60 }
  0x3f   :  { %410 = vmatpush.msra.mxu2 %v356_v32 }
  0x41   :  { %411 = vmatpush.msra.mxu2 %v355_v35 }
  0x6a   :  { %v90_v34 = vpop.permute.xlu2 %89 }
  0x6b   :  { %vm104_vm7 = vcmp.eq.s32.totalorder %v90_v34, %v75_v36 }
  0x72   :  { %v93_v37 = vpop.permute.xlu2 %92 }
  0x73   :  { %vm105_vm0 = vcmp.eq.s32.totalorder %v93_v37, %v75_v36 }
  0x74   :  { %451 = vmatmul.msk.f32.vlgmr.msra.gmra.mxu3 %vm105_vm0, %v540_v38 }
  0x7a   :  { %v261_v20 = vpop.permute.xlu2 %260 }
  0x81   :  { %v84_v40 = vpop.permute.xlu1 %83 }
  0x82   :  { %v78_v39 = vpop.permute.xlu0 %77  ;;  %vm102_vm3 = vcmp.eq.s32.totalorder %v84_v40, %v75_v36  ;;  %v354_v40 = vld [vmem:[#allocation5] sm:$0xff]  ;;  %v276_v43 = vpop.permute.xlu2 %275 }
  0x83   :  { %vm100_vm1 = vcmp.eq.s32.totalorder %v78_v39, %v75_v36  ;;  %412 = vmatpush.msra.mxu2 %v354_v40 }
  0x84   :  { %446 = vmatmul.msk.f32.vlgmr.msra.gmra.mxu0 %vm100_vm1, %v540_v38 }
  0x89   :  { %v87_v45 = vpop.permute.xlu1 %86 }
  0x8a   :  { %v81_v41 = vpop.permute.xlu0 %80  ;;  %vm103_vm5 = vcmp.eq.s32.totalorder %v87_v45, %v75_v36 }
  0x8b   :  { %vm101_vm2 = vcmp.eq.s32.totalorder %v81_v41, %v75_v36 }
  0x8c   :  { %447 = vmatmul.msk.f32.gmra.mxu0 %vm101_vm2, %v540_v38 }
  0x91   :  { %v99_v52 = vpop.permute.xlu1 %98 }
  0x92   :  { %v96_v48 = vpop.permute.xlu0 %95  ;;  %vm107_vm6 = vcmp.eq.s32.totalorder %v99_v52, %v75_v36 }
  0x93   :  { %vm106_vm4 = vcmp.eq.s32.totalorder %v96_v48, %v75_v36 }
  0x94   :  { %448 = vmatmul.msk.f32.gmra.mxu0 %vm102_vm3, %v540_v38  ;;  %452 = vmatmul.msk.f32.gmra.mxu3 %vm106_vm4, %v540_v38 }
  0x99   :  { %v271_v25 = vpop.permute.xlu1 %270 }
  0x9a   :  { %v266_v23 = vpop.permute.xlu0 %265 }
  0x9c   :  { %449 = vmatmul.msk.f32.gmra.mxu0 %vm103_vm5, %v540_v38  ;;  %453 = vmatmul.msk.f32.gmra.mxu3 %vm107_vm6, %v540_v38 }
  0xa1   :  { %v286_v49 = vpop.permute.xlu1 %285 }
  0xa2   :  { %v281_v45 = vpop.permute.xlu0 %280 }
  0xa4   :  { %450 = vmatmul.msk.f32.gmra.mxu0 %vm104_vm7, %v540_v38 }
  0xaa   :  { %v296_v22 = vpop.permute.xlu0 %295 }
  0xf7   :  { %v172_v2 = vpop.f32.mrf.mxu3 }
 0x101   :  { %v157_v61 = vpop.f32.mrf.mxu0 }
 0x102   :  { %217 = vmatmul.f32.vlgmr.msra.gmra.mxu1 %v157_v61 }
 0x109   :  { %v160_v62 = vpop.f32.mrf.mxu0 }
 0x10a   :  { %220 = vmatmul.f32.gmra.mxu1 %v160_v62 }
 0x111   :  { %v163_v63 = vpop.f32.mrf.mxu0 }
 0x112   :  { %223 = vmatmul.f32.gmra.mxu1 %v163_v63 }
 0x117   :  { %v175_v3 = vpop.f32.mrf.mxu3 }
 0x119   :  { %v166_v0 = vpop.f32.mrf.mxu0 }
 0x11a   :  { %226 = vmatmul.f32.gmra.mxu1 %v166_v0 }
 0x11f   :  { %v178_v4 = vpop.f32.mrf.mxu3 }
 0x121   :  { %v169_v1 = vpop.f32.mrf.mxu0 }
 0x122   :  { %229 = vmatmul.f32.gmra.mxu1 %v169_v1  ;;  %v291_v1 = vpop.permute.xlu2 %290 }
 0x12a   :  { %232 = vmatmul.f32.gmra.mxu1 %v172_v2 }
 0x132   :  { %235 = vmatmul.f32.gmra.mxu1 %v175_v3 }
 0x13a   :  { %238 = vmatmul.f32.gmra.mxu1 %v178_v4 }
 0x17f   :  { %v218_v5 = vpop.f32.mrf.mxu1 }
 0x180   :  { %v219_v28 = vadd.f32 %v699_v19, %v218_v5 }
 0x182   :  { %v242_v36 = vmax.f32 %v219_v28, 0.0 }
 0x184   :  { %v298_v46 = vmul.f32 %v261_v20, %v242_v36 }
 0x186   :  { %v306_v54 = vrot.slane %v298_v46, 4 }
 0x187   :  { %v221_v6 = vpop.f32.mrf.mxu1 }
 0x188   :  { %v222_v24 = vadd.f32 %v699_v19, %v221_v6  ;;  %v307_v62 = vmax.f32 %v298_v46, %v306_v54 }
 0x18a   :  { %v243_v33 = vmax.f32 %v222_v24, 0.0  ;;  %v308_v7 = vrot.slane %v307_v62, 2 }
 0x18c   :  { %v299_v41 = vmul.f32 %v266_v23, %v243_v33  ;;  %v309_v17 = vmax.f32 %v307_v62, %v308_v7 }
 0x18e   :  { %v312_v51 = vrot.slane %v299_v41, 4 }
 0x18f   :  { %v224_v9 = vpop.f32.mrf.mxu1 }
 0x190   :  { %v225_v26 = vadd.f32 %v699_v19, %v224_v9  ;;  %v313_v58 = vmax.f32 %v299_v41, %v312_v51 }
 0x192   :  { %v244_v34 = vmax.f32 %v225_v26, 0.0  ;;  %v314_v3 = vrot.slane %v313_v58, 2 }
 0x194   :  { %v300_v44 = vmul.f32 %v271_v25, %v244_v34  ;;  %v315_v12 = vmax.f32 %v313_v58, %v314_v3 }
 0x196   :  { %v318_v53 = vrot.slane %v300_v44, 4  ;;  %v316_v24 = vrot.slane %v315_v12, 1 }
 0x197   :  { %v227_v14 = vpop.f32.mrf.mxu1 }
 0x198   :  { %v228_v29 = vadd.f32 %v699_v19, %v227_v14  ;;  %v319_v61 = vmax.f32 %v300_v44, %v318_v53  ;;  %v317_v33 = vmax.f32 %v315_v12, %v316_v24  ;;  %v480_v53 = vld [vmem:[%s724_s6] ss:$0 sm:$0xff] }
 0x19a   :  { %v245_v37 = vmax.f32 %v228_v29, 0.0  ;;  %v320_v6 = vrot.slane %v319_v61, 2  ;;  %v310_v29 = vrot.slane %v309_v17, 1 }
 0x19c   :  { %v301_v47 = vmul.f32 %v276_v43, %v245_v37  ;;  %v321_v16 = vmax.f32 %v319_v61, %v320_v6  ;;  %v311_v37 = vmax.f32 %v309_v17, %v310_v29 }
 0x19e   :  { %v324_v55 = vrot.slane %v301_v47, 4  ;;  %v322_v27 = vrot.slane %v321_v16, 1  ;;  %v383_v41 = vsel %vm382_vm8, %v317_v33, %v311_v37 }
 0x19f   :  { %v230_v21 = vpop.f32.mrf.mxu1 }
 0x1a0   :  { %v231_v31 = vadd.f32 %v699_v19, %v230_v21  ;;  %v325_v63 = vmax.f32 %v301_v47, %v324_v55 }
 0x1a2   :  { %v246_v38 = vmax.f32 %v231_v31, 0.0  ;;  %v326_v8 = vrot.slane %v325_v63, 2 }
 0x1a4   :  { %v302_v50 = vmul.f32 %v281_v45, %v246_v38  ;;  %v327_v18 = vmax.f32 %v325_v63, %v326_v8 }
 0x1a6   :  { %v330_v56 = vrot.slane %v302_v50, 4  ;;  %v328_v30 = vrot.slane %v327_v18, 1 }
 0x1a7   :  { %v233_v39 = vpop.f32.mrf.mxu1 }
 0x1a8   :  { %v234_v42 = vadd.f32 %v699_v19, %v233_v39  ;;  %v331_v2 = vmax.f32 %v302_v50, %v330_v56  ;;  %v329_v38 = vmax.f32 %v327_v18, %v328_v30  ;;  %v481_v56 = vld [vmem:[%s725_s7] ss:$0 sm:$0xff] }
 0x1aa   :  { %v247_v48 = vmax.f32 %v234_v42, 0.0  ;;  %v332_v10 = vrot.slane %v331_v2, 2 }
 0x1ac   :  { %v303_v52 = vmul.f32 %v286_v49, %v247_v48  ;;  %v333_v23 = vmax.f32 %v331_v2, %v332_v10 }
 0x1ae   :  { %v336_v59 = vrot.slane %v303_v52, 4  ;;  %v334_v32 = vrot.slane %v333_v23, 1 }
 0x1af   :  { %v236_v57 = vpop.f32.mrf.mxu1 }
 0x1b0   :  { %v237_v60 = vadd.f32 %v699_v19, %v236_v57  ;;  %v337_v4 = vmax.f32 %v303_v52, %v336_v59  ;;  %v335_v40 = vmax.f32 %v333_v23, %v334_v32  ;;  %v482_v59 = vld [vmem:[#allocation2] ss:$0 sm:$0xff] }
 0x1b2   :  { %v248_v0 = vmax.f32 %v237_v60, 0.0  ;;  %v338_v13 = vrot.slane %v337_v4, 2 }
 0x1b4   :  { %v304_v5 = vmul.f32 %v291_v1, %v248_v0  ;;  %v339_v25 = vmax.f32 %v337_v4, %v338_v13 }
 0x1b6   :  { %v342_v9 = vrot.slane %v304_v5, 4  ;;  %v340_v34 = vrot.slane %v339_v25, 1 }
 0x1b7   :  { %v239_v11 = vpop.f32.mrf.mxu1 }
 0x1b8   :  { %v343_v14 = vmax.f32 %v304_v5, %v342_v9  ;;  %v240_v15 = vadd.f32 %v699_v19, %v239_v11  ;;  %v323_v19 = vmax.f32 %v321_v16, %v322_v27  ;;  %v341_v42 = vmax.f32 %v339_v25, %v340_v34 }
 0x1ba   :  { %v344_v20 = vrot.slane %v343_v14, 2  ;;  %v249_v21 = vmax.f32 %v240_v15, 0.0  ;;  %v385_v45 = vsel %vm384_vm9, %v323_v19, %v383_v41 }
 0x1bb   :  { %v387_v47 = vsel %vm386_vm10, %v329_v38, %v385_v45 }
 0x1bc   :  { %v305_v26 = vmul.f32 %v296_v22, %v249_v21  ;;  %v345_v28 = vmax.f32 %v343_v14, %v344_v20  ;;  %v389_v48 = vsel %vm388_vm11, %v335_v40, %v387_v47 }
 0x1bd   :  { %v391_v50 = vsel %vm390_vm12, %v341_v42, %v389_v48 }
 0x1be   :  { %v348_v31 = vrot.slane %v305_v26, 4  ;;  %v346_v36 = vrot.slane %v345_v28, 1 }
 0x1c0   :  { %v349_v35 = vmax.f32 %v305_v26, %v348_v31  ;;  %v347_v44 = vmax.f32 %v345_v28, %v346_v36 }
 0x1c2   :  { %v350_v39 = vrot.slane %v349_v35, 2  ;;  %v393_v51 = vsel %vm392_vm13, %v347_v44, %v391_v50 }
 0x1c4   :  { %v351_v43 = vmax.f32 %v349_v35, %v350_v39 }
 0x1c6   :  { %v352_v46 = vrot.slane %v351_v43, 1 }
 0x1c8   :  { %v353_v49 = vmax.f32 %v351_v43, %v352_v46 }
 0x1ca   :  { %v395_v52 = vsel %vm394_vm14, %v353_v49, %v393_v51 }
 0x1cb   :  { %413 = vmatmul.f32.vlgmr.msra.gmra.mxu2 %v395_v52 }
 0x24e   :  { %v414_v54 = vpop.f32.mrf.mxu2 }
 0x24f   :  { %v415_v55 = vadd.f32 %v480_v53, %v414_v54 }
 0x251   :  { %v417_v57 = vmax.f32 %v415_v55, 0.0 }
 0x253   :  { %v422_v58 = vmul.f32 %v481_v56, %v417_v57 }
 0x255   :  { %423 = vadd.xlane.f32.xlu1 %v422_v58 }
 0x2c8   :  { %v424_v60 = vpop.xlane.xlu1 %423 }
 0x2c9   :  { %v429_v61 = vadd.f32 %v482_v59, %v424_v60 }
 0x2cb   :  { %431 = vst.msk [vmem:[%s727_s9] sm:$0xff] %vm430_vm15, %v429_v61 }
 0x2cc   :  { %436 = vsyncpa [#allocation4], 1 }
 0x2cd   :  { %437 = vsyncpa [#allocation6], 1 }

</bundles_post_ra>
